<compile_context>
chip_gen: v5e
topology: v5e:2x2
jax: 0.10.0
libtpu: 0.0.40
codegen_flags: <defaults>
</compile_context>

<pallas_src>
import jax
import jax.numpy as jnp
from jax import lax
from jax.experimental import pallas as pl
from jax.experimental.pallas import tpu as pltpu


# dot_general dimension numbers contracting the minor dim of both operands:
#   (F, K) x (B, K) -> (F, B).   Same pattern as q @ k^T in flash attention,
# so the MXU performs the batch-major -> feature-major layout change for free.
_NT = (((1,), (1,)), ((), ()))


def _ae_kernel(x_ref,
               w1_ref, b1_ref, w2_ref, b2_ref, w3_ref, b3_ref,   # encoder
               w4_ref, b4_ref, w5_ref, b5_ref, w6_ref, b6_ref,   # decoder
               enc_ref, dec_ref):
    """One batch tile: x (tb, in_dim) -> enc (tb, out_dim), dec (tb, in_dim)."""
    x = x_ref[...]                                                    # (tb, in_dim)

    # ----- encoder (feature-major activations: batch lives on the 128-lane axis)
    h = lax.dot_general(w1_ref[...], x, _NT, preferred_element_type=jnp.float32)
    h = jnp.tanh(h + b1_ref[...])                                     # (10, tb)
    h = jnp.tanh(jnp.dot(w2_ref[...], h,
                         preferred_element_type=jnp.float32) + b2_ref[...])   # (5, tb)
    enc = jnp.dot(w3_ref[...], h,
                  preferred_element_type=jnp.float32) + b3_ref[...]   # (out_dim_p, tb)

    # ----- decoder -----
    d = jnp.tanh(jnp.dot(w4_ref[...], enc,
                         preferred_element_type=jnp.float32) + b4_ref[...])   # (5, tb)
    d = jnp.tanh(jnp.dot(w5_ref[...], d,
                         preferred_element_type=jnp.float32) + b5_ref[...])   # (10, tb)
    dec = jnp.dot(w6_ref[...], d,
                  preferred_element_type=jnp.float32) + b6_ref[...]   # (in_dim_p, tb)

    # ----- write back in the module's natural (batch, feature) layout -----
    # enc/dec feature rows are padded (in the wrapper) to multiples of 8, so the
    # packed slab transposes cleanly on the XLU (hidden under the output DMA).
    in_dim_p = dec.shape[0]
    in_dim = dec_ref.shape[1]
    out_dim = enc_ref.shape[1]
    slab_t = jnp.concatenate([dec, enc], axis=0).T                    # (tb, in_dim_p + out_dim_p)
    dec_ref[...] = slab_t[:, :in_dim].astype(dec_ref.dtype)
    enc_ref[...] = slab_t[:, in_dim_p:in_dim_p + out_dim].astype(enc_ref.dtype)


def _round_up(n, m):
    return ((n + m - 1) // m) * m


def autoencoder_forward(x, params, *, block_batch=8192):
    """Forward pass of AutoEncoder: x (batch, in_dim) -> (encoded, decoded).

    params holds PyTorch-Linear-style weights w1..w6 of shape (fan_in, fan_out)
    and biases b1..b6 of shape (fan_out,) (encoder = 1..3, decoder = 4..6).
    """
    batch, in_dim = x.shape
    hidden = params["w1"].shape[1]
    out_dim = params["w3"].shape[1]

    # --- batch tile: always a multiple of 128 (lane-dense), big enough to
    # --- amortize per-step pipeline overhead, and >= 2 grid steps when possible
    # --- so both v7x TensorCores are used (harmless on single-TC v5e/v6e).
    padded128 = _round_up(batch, 128)
    tb = min(max(128, _round_up(block_batch, 128)), padded128)
    tb = max(128, min(tb, _round_up(padded128 // 2, 128)))
    # Keep double-buffered I/O tiles + feature-major intermediates inside VMEM.
    per_row_bytes = 4 * (2 * (2 * in_dim + out_dim)            # dbl-buffered x/enc/dec tiles
                         + 4 * hidden + 2 * out_dim + in_dim + 16)  # live intermediates
    vmem_budget = 40 * 1024 * 1024
    tb = min(tb, max(128, (vmem_budget // per_row_bytes) // 128 * 128))

    padded = _round_up(batch, tb)
    grid = padded // tb
    x_p = x if padded == batch else jnp.pad(x, ((0, padded - batch), (0, 0)))

    # Raise the scoped-VMEM limit only when a large caller tile needs it
    # (v5e default is 16 MiB; keep under ~48 MiB for v7x's 64 MiB physical VMEM).
    est_vmem = per_row_bytes * tb
    vmem_limit = None
    if est_vmem > 12 * 1024 * 1024:
        vmem_limit = int(min(48 * 1024 * 1024, max(32 * 1024 * 1024, 2 * est_vmem)))

    # ----- tiny, one-off host-side weight prep (dozens of floats) -----
    # Feature dims of the two output heads are padded to multiples of 8 so the
    # in-kernel slab transpose sees aligned sublane counts.
    out_dim_p = _round_up(out_dim, 8)
    in_dim_p = _round_up(in_dim, 8)

    def _pad_rows(a, rows):
        return a if a.shape[0] == rows else jnp.pad(a, ((0, rows - a.shape[0]), (0, 0)))

    def _pad_cols(a, cols):
        return a if a.shape[1] == cols else jnp.pad(a, ((0, 0), (0, cols - a.shape[1])))

    def _col(b):
        return b.reshape(-1, 1)

    weights = [
        (params["w1"].T, _col(params["b1"])),                                  # NT lhs
        (params["w2"].T, _col(params["b2"])),
        (_pad_rows(params["w3"].T, out_dim_p), _pad_rows(_col(params["b3"]), out_dim_p)),
        (_pad_cols(params["w4"].T, out_dim_p), _col(params["b4"])),
        (params["w5"].T, _col(params["b5"])),
        (_pad_rows(params["w6"].T, in_dim_p), _pad_rows(_col(params["b6"]), in_dim_p)),
    ]

    def _resident(shape):
        # Same block index every grid step -> stays pinned in VMEM (DMA'd once).
        return pl.BlockSpec(shape, lambda i: (0, 0))

    args = [x_p]
    in_specs = [pl.BlockSpec((tb, in_dim), lambda i: (i, 0))]
    for w_t, b_c in weights:
        args += [w_t, b_c]
        in_specs += [_resident(w_t.shape), _resident(b_c.shape)]

    enc_p, dec_p = pl.pallas_call(
        _ae_kernel,
        grid=(grid,),
        in_specs=in_specs,
        out_specs=(
            pl.BlockSpec((tb, out_dim), lambda i: (i, 0)),
            pl.BlockSpec((tb, in_dim), lambda i: (i, 0)),
        ),
        out_shape=(
            jax.ShapeDtypeStruct((padded, out_dim), jnp.float32),
            jax.ShapeDtypeStruct((padded, in_dim), jnp.float32),
        ),
        compiler_params=pltpu.CompilerParams(
            dimension_semantics=("parallel",),      # megacore sharding on v7x
            vmem_limit_bytes=vmem_limit,
        ),
    )(*args)

    if padded != batch:                              # drop batch padding (keep this!)
        enc_p = enc_p[:batch]
        dec_p = dec_p[:batch]
    return enc_p, dec_p


def init_params(key, in_dim, out_dim, hidden_dim=10):
    """PyTorch-Linear-style init: weights (fan_in, fan_out), biases (fan_out,)."""
    half = hidden_dim // 2
    dims = [(in_dim, hidden_dim), (hidden_dim, half), (half, out_dim),
            (out_dim, half), (half, hidden_dim), (hidden_dim, in_dim)]
    params = {}
    for i, (fi, fo) in enumerate(dims, start=1):
        key, kw, kb = jax.random.split(key, 3)
        bound = 1.0 / (fi ** 0.5)
        params[f"w{i}"] = jax.random.uniform(kw, (fi, fo), jnp.float32, -bound, bound)
        params[f"b{i}"] = jax.random.uniform(kb, (fo,), jnp.float32, -bound, bound)
    return params


def reference_forward(x, params):
    """Pure-JAX reference of the same forward pass (full-precision matmuls)."""
    hp = lax.Precision.HIGHEST
    dot = lambda a, b: jnp.dot(a, b, precision=hp)
    h = jnp.tanh(dot(x, params["w1"]) + params["b1"])
    h = jnp.tanh(dot(h, params["w2"]) + params["b2"])
    enc = dot(h, params["w3"]) + params["b3"]
    d = jnp.tanh(dot(enc, params["w4"]) + params["b4"])
    d = jnp.tanh(dot(d, params["w5"]) + params["b5"])
    dec = dot(d, params["w6"]) + params["b6"]
    return enc, dec


if __name__ == "__main__":
    key = jax.random.PRNGKey(0)
    # Small demo shapes: exercises batch padding (200 -> 256) and a 2-step grid.
    batch, in_dim, out_dim = 200, 16, 4

    k_x, k_p = jax.random.split(key)
    x = jax.random.normal(k_x, (batch, in_dim), jnp.float32)
    params = init_params(k_p, in_dim, out_dim)

    fwd = jax.jit(autoencoder_forward)
    encoded, decoded = fwd(x, params)
    jax.block_until_ready((encoded, decoded))

    enc_ref, dec_ref = reference_forward(x, params)
    assert encoded.shape == (batch, out_dim)
    assert decoded.shape == (batch, in_dim)
    # Tolerance covers MXU multi-pass f32 vs XLA HIGHEST accumulation-order deltas.
    assert jnp.allclose(encoded, enc_ref, atol=2e-3, rtol=2e-3)
    assert jnp.allclose(decoded, dec_ref, atol=2e-3, rtol=2e-3)

    print("KERNEL_OK")
</pallas_src>

<mosaic_0001>
module attributes {stable_mosaic.version = 11 : i64} {
  func.func @_ae_kernel(%arg0: i32, %arg1: memref<128x16xf32, #tpu.memory_space<vmem>>, %arg2: memref<10x16xf32, #tpu.memory_space<vmem>>, %arg3: memref<10x1xf32, #tpu.memory_space<vmem>>, %arg4: memref<5x10xf32, #tpu.memory_space<vmem>>, %arg5: memref<5x1xf32, #tpu.memory_space<vmem>>, %arg6: memref<8x5xf32, #tpu.memory_space<vmem>>, %arg7: memref<8x1xf32, #tpu.memory_space<vmem>>, %arg8: memref<5x8xf32, #tpu.memory_space<vmem>>, %arg9: memref<5x1xf32, #tpu.memory_space<vmem>>, %arg10: memref<10x5xf32, #tpu.memory_space<vmem>>, %arg11: memref<10x1xf32, #tpu.memory_space<vmem>>, %arg12: memref<16x10xf32, #tpu.memory_space<vmem>>, %arg13: memref<16x1xf32, #tpu.memory_space<vmem>>, %arg14: memref<128x4xf32, #tpu.memory_space<vmem>>, %arg15: memref<128x16xf32, #tpu.memory_space<vmem>>) attributes {dimension_semantics = [#tpu.dimension_semantics<parallel>], iteration_bounds = array<i64: 2>, scalar_prefetch = 0 : i64, scratch_operands = 0 : i64, tpu.core_type = #tpu.core_type<tc>, window_params = [{transform_indices = @transform_0, window_bounds = array<i64: 128, 16>}, {pipeline_mode = #tpu.pipeline_mode<synchronous>, transform_indices = @transform_1, window_bounds = array<i64: 10, 16>}, {pipeline_mode = #tpu.pipeline_mode<synchronous>, transform_indices = @transform_2, window_bounds = array<i64: 10, 1>}, {pipeline_mode = #tpu.pipeline_mode<synchronous>, transform_indices = @transform_3, window_bounds = array<i64: 5, 10>}, {pipeline_mode = #tpu.pipeline_mode<synchronous>, transform_indices = @transform_4, window_bounds = array<i64: 5, 1>}, {pipeline_mode = #tpu.pipeline_mode<synchronous>, transform_indices = @transform_5, window_bounds = array<i64: 8, 5>}, {pipeline_mode = #tpu.pipeline_mode<synchronous>, transform_indices = @transform_6, window_bounds = array<i64: 8, 1>}, {pipeline_mode = #tpu.pipeline_mode<synchronous>, transform_indices = @transform_7, window_bounds = array<i64: 5, 8>}, {pipeline_mode = #tpu.pipeline_mode<synchronous>, transform_indices = @transform_8, window_bounds = array<i64: 5, 1>}, {pipeline_mode = #tpu.pipeline_mode<synchronous>, transform_indices = @transform_9, window_bounds = array<i64: 10, 5>}, {pipeline_mode = #tpu.pipeline_mode<synchronous>, transform_indices = @transform_10, window_bounds = array<i64: 10, 1>}, {pipeline_mode = #tpu.pipeline_mode<synchronous>, transform_indices = @transform_11, window_bounds = array<i64: 16, 10>}, {pipeline_mode = #tpu.pipeline_mode<synchronous>, transform_indices = @transform_12, window_bounds = array<i64: 16, 1>}, {transform_indices = @transform_13, window_bounds = array<i64: 128, 4>}, {transform_indices = @transform_14, window_bounds = array<i64: 128, 16>}]} {
    %c0 = arith.constant 0 : index
    %c0_0 = arith.constant 0 : index
    %0 = vector.load %arg1[%c0, %c0_0] : memref<128x16xf32, #tpu.memory_space<vmem>>, vector<128x16xf32>
    %c0_1 = arith.constant 0 : index
    %c0_2 = arith.constant 0 : index
    %1 = vector.load %arg2[%c0_1, %c0_2] : memref<10x16xf32, #tpu.memory_space<vmem>>, vector<10x16xf32>
    %cst = arith.constant dense<0.000000e+00> : vector<10x128xf32>
    %2 = tpu.matmul %1, %0, %cst {dimension_numbers = #tpu.dot_dimension_numbers<[1], [1], [0], [0], [0, 0, 1, 0], [], []>} : vector<10x16xf32>, vector<128x16xf32>, vector<10x128xf32> -> vector<10x128xf32>
    %c0_3 = arith.constant 0 : index
    %c0_4 = arith.constant 0 : index
    %3 = vector.load %arg3[%c0_3, %c0_4] : memref<10x1xf32, #tpu.memory_space<vmem>>, vector<10x1xf32>
    %4 = vector.broadcast %3 : vector<10x1xf32> to vector<10x128xf32>
    %5 = arith.addf %2, %4 : vector<10x128xf32>
    %6 = math.tanh %5 : vector<10x128xf32>
    %c0_5 = arith.constant 0 : index
    %c0_6 = arith.constant 0 : index
    %7 = vector.load %arg4[%c0_5, %c0_6] : memref<5x10xf32, #tpu.memory_space<vmem>>, vector<5x10xf32>
    %cst_7 = arith.constant dense<0.000000e+00> : vector<5x128xf32>
    %8 = tpu.matmul %7, %6, %cst_7 {dimension_numbers = #tpu.dot_dimension_numbers<[1], [0], [0], [1], [0, 0, 1, 1], [], []>} : vector<5x10xf32>, vector<10x128xf32>, vector<5x128xf32> -> vector<5x128xf32>
    %c0_8 = arith.constant 0 : index
    %c0_9 = arith.constant 0 : index
    %9 = vector.load %arg5[%c0_8, %c0_9] : memref<5x1xf32, #tpu.memory_space<vmem>>, vector<5x1xf32>
    %10 = vector.broadcast %9 : vector<5x1xf32> to vector<5x128xf32>
    %11 = arith.addf %8, %10 : vector<5x128xf32>
    %12 = math.tanh %11 : vector<5x128xf32>
    %c0_10 = arith.constant 0 : index
    %c0_11 = arith.constant 0 : index
    %13 = vector.load %arg6[%c0_10, %c0_11] : memref<8x5xf32, #tpu.memory_space<vmem>>, vector<8x5xf32>
    %cst_12 = arith.constant dense<0.000000e+00> : vector<8x128xf32>
    %14 = tpu.matmul %13, %12, %cst_12 {dimension_numbers = #tpu.dot_dimension_numbers<[1], [0], [0], [1], [0, 0, 1, 1], [], []>} : vector<8x5xf32>, vector<5x128xf32>, vector<8x128xf32> -> vector<8x128xf32>
    %c0_13 = arith.constant 0 : index
    %c0_14 = arith.constant 0 : index
    %15 = vector.load %arg7[%c0_13, %c0_14] : memref<8x1xf32, #tpu.memory_space<vmem>>, vector<8x1xf32>
    %16 = vector.broadcast %15 : vector<8x1xf32> to vector<8x128xf32>
    %17 = arith.addf %14, %16 : vector<8x128xf32>
    %c0_15 = arith.constant 0 : index
    %c0_16 = arith.constant 0 : index
    %18 = vector.load %arg8[%c0_15, %c0_16] : memref<5x8xf32, #tpu.memory_space<vmem>>, vector<5x8xf32>
    %cst_17 = arith.constant dense<0.000000e+00> : vector<5x128xf32>
    %19 = tpu.matmul %18, %17, %cst_17 {dimension_numbers = #tpu.dot_dimension_numbers<[1], [0], [0], [1], [0, 0, 1, 1], [], []>} : vector<5x8xf32>, vector<8x128xf32>, vector<5x128xf32> -> vector<5x128xf32>
    %c0_18 = arith.constant 0 : index
    %c0_19 = arith.constant 0 : index
    %20 = vector.load %arg9[%c0_18, %c0_19] : memref<5x1xf32, #tpu.memory_space<vmem>>, vector<5x1xf32>
    %21 = vector.broadcast %20 : vector<5x1xf32> to vector<5x128xf32>
    %22 = arith.addf %19, %21 : vector<5x128xf32>
    %23 = math.tanh %22 : vector<5x128xf32>
    %c0_20 = arith.constant 0 : index
    %c0_21 = arith.constant 0 : index
    %24 = vector.load %arg10[%c0_20, %c0_21] : memref<10x5xf32, #tpu.memory_space<vmem>>, vector<10x5xf32>
    %cst_22 = arith.constant dense<0.000000e+00> : vector<10x128xf32>
    %25 = tpu.matmul %24, %23, %cst_22 {dimension_numbers = #tpu.dot_dimension_numbers<[1], [0], [0], [1], [0, 0, 1, 1], [], []>} : vector<10x5xf32>, vector<5x128xf32>, vector<10x128xf32> -> vector<10x128xf32>
    %c0_23 = arith.constant 0 : index
    %c0_24 = arith.constant 0 : index
    %26 = vector.load %arg11[%c0_23, %c0_24] : memref<10x1xf32, #tpu.memory_space<vmem>>, vector<10x1xf32>
    %27 = vector.broadcast %26 : vector<10x1xf32> to vector<10x128xf32>
    %28 = arith.addf %25, %27 : vector<10x128xf32>
    %29 = math.tanh %28 : vector<10x128xf32>
    %c0_25 = arith.constant 0 : index
    %c0_26 = arith.constant 0 : index
    %30 = vector.load %arg12[%c0_25, %c0_26] : memref<16x10xf32, #tpu.memory_space<vmem>>, vector<16x10xf32>
    %cst_27 = arith.constant dense<0.000000e+00> : vector<16x128xf32>
    %31 = tpu.matmul %30, %29, %cst_27 {dimension_numbers = #tpu.dot_dimension_numbers<[1], [0], [0], [1], [0, 0, 1, 1], [], []>} : vector<16x10xf32>, vector<10x128xf32>, vector<16x128xf32> -> vector<16x128xf32>
    %c0_28 = arith.constant 0 : index
    %c0_29 = arith.constant 0 : index
    %32 = vector.load %arg13[%c0_28, %c0_29] : memref<16x1xf32, #tpu.memory_space<vmem>>, vector<16x1xf32>
    %33 = vector.broadcast %32 : vector<16x1xf32> to vector<16x128xf32>
    %34 = arith.addf %31, %33 : vector<16x128xf32>
    %35 = tpu.concatenate %34, %17 in 0 : vector<16x128xf32>, vector<8x128xf32> -> vector<24x128xf32>
    %36 = tpu.transpose %35, [1, 0] : vector<24x128xf32> -> vector<128x24xf32>
    %37 = vector.extract_strided_slice %36 {offsets = [0, 0], sizes = [128, 16], strides = [1, 1]} : vector<128x24xf32> to vector<128x16xf32>
    %c0_30 = arith.constant 0 : index
    %c0_31 = arith.constant 0 : index
    %38 = vector.load %arg15[%c0_30, %c0_31] : memref<128x16xf32, #tpu.memory_space<vmem>>, vector<128x16xf32>
    tpu.vector_store %arg15[%c0_30, %c0_31], %37 {strides = array<i32>} : memref<128x16xf32, #tpu.memory_space<vmem>>, vector<128x16xf32>,
    %39 = vector.extract_strided_slice %36 {offsets = [0, 16], sizes = [128, 4], strides = [1, 1]} : vector<128x24xf32> to vector<128x4xf32>
    %c0_32 = arith.constant 0 : index
    %c0_33 = arith.constant 0 : index
    %40 = vector.load %arg14[%c0_32, %c0_33] : memref<128x4xf32, #tpu.memory_space<vmem>>, vector<128x4xf32>
    tpu.vector_store %arg14[%c0_32, %c0_33], %39 {strides = array<i32>} : memref<128x4xf32, #tpu.memory_space<vmem>>, vector<128x4xf32>,
    return
  }
  func.func @transform_0(%arg0: i32) -> (i32, i32) {
    %c0_i32 = arith.constant 0 : i32
    %c0_i32_0 = arith.constant 0 : i32
    return %arg0, %c0_i32 : i32, i32
  }
  func.func @transform_1(%arg0: i32) -> (i32, i32) {
    %c0_i32 = arith.constant 0 : i32
    %c0_i32_0 = arith.constant 0 : i32
    %c0_i32_1 = arith.constant 0 : i32
    return %c0_i32, %c0_i32_0 : i32, i32
  }
  func.func @transform_2(%arg0: i32) -> (i32, i32) {
    %c0_i32 = arith.constant 0 : i32
    %c0_i32_0 = arith.constant 0 : i32
    %c0_i32_1 = arith.constant 0 : i32
    return %c0_i32, %c0_i32_0 : i32, i32
  }
  func.func @transform_3(%arg0: i32) -> (i32, i32) {
    %c0_i32 = arith.constant 0 : i32
    %c0_i32_0 = arith.constant 0 : i32
    %c0_i32_1 = arith.constant 0 : i32
    return %c0_i32, %c0_i32_0 : i32, i32
  }
  func.func @transform_4(%arg0: i32) -> (i32, i32) {
    %c0_i32 = arith.constant 0 : i32
    %c0_i32_0 = arith.constant 0 : i32
    %c0_i32_1 = arith.constant 0 : i32
    return %c0_i32, %c0_i32_0 : i32, i32
  }
  func.func @transform_5(%arg0: i32) -> (i32, i32) {
    %c0_i32 = arith.constant 0 : i32
    %c0_i32_0 = arith.constant 0 : i32
    %c0_i32_1 = arith.constant 0 : i32
    return %c0_i32, %c0_i32_0 : i32, i32
  }
  func.func @transform_6(%arg0: i32) -> (i32, i32) {
    %c0_i32 = arith.constant 0 : i32
    %c0_i32_0 = arith.constant 0 : i32
    %c0_i32_1 = arith.constant 0 : i32
    return %c0_i32, %c0_i32_0 : i32, i32
  }
  func.func @transform_7(%arg0: i32) -> (i32, i32) {
    %c0_i32 = arith.constant 0 : i32
    %c0_i32_0 = arith.constant 0 : i32
    %c0_i32_1 = arith.constant 0 : i32
    return %c0_i32, %c0_i32_0 : i32, i32
  }
  func.func @transform_8(%arg0: i32) -> (i32, i32) {
    %c0_i32 = arith.constant 0 : i32
    %c0_i32_0 = arith.constant 0 : i32
    %c0_i32_1 = arith.constant 0 : i32
    return %c0_i32, %c0_i32_0 : i32, i32
  }
  func.func @transform_9(%arg0: i32) -> (i32, i32) {
    %c0_i32 = arith.constant 0 : i32
    %c0_i32_0 = arith.constant 0 : i32
    %c0_i32_1 = arith.constant 0 : i32
    return %c0_i32, %c0_i32_0 : i32, i32
  }
  func.func @transform_10(%arg0: i32) -> (i32, i32) {
    %c0_i32 = arith.constant 0 : i32
    %c0_i32_0 = arith.constant 0 : i32
    %c0_i32_1 = arith.constant 0 : i32
    return %c0_i32, %c0_i32_0 : i32, i32
  }
  func.func @transform_11(%arg0: i32) -> (i32, i32) {
    %c0_i32 = arith.constant 0 : i32
    %c0_i32_0 = arith.constant 0 : i32
    %c0_i32_1 = arith.constant 0 : i32
    return %c0_i32, %c0_i32_0 : i32, i32
  }
  func.func @transform_12(%arg0: i32) -> (i32, i32) {
    %c0_i32 = arith.constant 0 : i32
    %c0_i32_0 = arith.constant 0 : i32
    %c0_i32_1 = arith.constant 0 : i32
    return %c0_i32, %c0_i32_0 : i32, i32
  }
  func.func @transform_13(%arg0: i32) -> (i32, i32) {
    %c0_i32 = arith.constant 0 : i32
    %c0_i32_0 = arith.constant 0 : i32
    return %arg0, %c0_i32 : i32, i32
  }
  func.func @transform_14(%arg0: i32) -> (i32, i32) {
    %c0_i32 = arith.constant 0 : i32
    %c0_i32_0 = arith.constant 0 : i32
    return %arg0, %c0_i32 : i32, i32
  }
}

</mosaic_0001>

<bundles_post_ra>
// kernel: autoencoder_forward.1
= control target key start
LH: loop header
LB: loop body
LE: loop exit
PB: predicated region body
PF: predicated region fallthrough
CT: control target
= control target key end

     0   :  { %s1164_s29 = smov 0   ;;  %s1373_s0 = inlined_call_operand.vmem [shape: f32[256,16], index: 0, kind: input, shape index: {}]   ;;  %s1374_s1 = inlined_call_operand.vmem [shape: f32[10,16], index: 1, kind: input, shape index: {}]   ;;  %s1375_s2 = inlined_call_operand.vmem [shape: f32[10,1], index: 2, kind: input, shape index: {}]   ;;  %s1376_s3 = inlined_call_operand.vmem [shape: f32[5,10], index: 3, kind: input, shape index: {}]   ;;  %s1377_s4 = inlined_call_operand.vmem [shape: f32[5,1], index: 4, kind: input, shape index: {}]   ;;  %s1378_s5 = inlined_call_operand.vmem [shape: f32[8,5], index: 5, kind: input, shape index: {}]   ;;  %s1379_s6 = inlined_call_operand.vmem [shape: f32[8,1], index: 6, kind: input, shape index: {}]   ;;  %s1380_s7 = inlined_call_operand.vmem [shape: f32[5,8], index: 7, kind: input, shape index: {}]   ;;  %s1381_s8 = inlined_call_operand.vmem [shape: f32[5,1], index: 8, kind: input, shape index: {}]   ;;  %s1382_s9 = inlined_call_operand.vmem [shape: f32[10,5], index: 9, kind: input, shape index: {}]   ;;  %s1383_s10 = inlined_call_operand.vmem [shape: f32[10,1], index: 10, kind: input, shape index: {}]   ;;  %s1384_s11 = inlined_call_operand.vmem [shape: f32[16,10], index: 11, kind: input, shape index: {}]   ;;  %s1385_s12 = inlined_call_operand.vmem [shape: f32[16,1], index: 12, kind: input, shape index: {}]   ;;  %s1386_s13 = inlined_call_operand.vmem [shape: f32[256,4], index: 13, kind: output, shape index: {0}]   ;;  %s1387_s14 = inlined_call_operand.vmem [shape: f32[256,16], index: 14, kind: output, shape index: {1}]  }
   0x1 LB: > { %s1011_s30 = sadd.s32 4294967295, %s1085_s29   ;;  %p1015_p0 = scmp.ge.s32.totalorder %s1085_s29, 1  ;;  %s1085_s29 = sphi %s1164_s29, %s25_s29  }
   0x2   : > { %p416_p1 = scmp.lt.s32.totalorder %s1085_s29, 3 }
   0x4   : > { %p417_p2 = pnand %p1015_p0, %p416_p1 }
   0x5   : > { %s1016_s15 = sshll.u32 (!%p417_p2), %s1011_s30, 4  ;;  %s1088_s17 = smov (!%p417_p2), 112  }
   0x6   : > { %420 = sbr.rel (%p417_p2) target bundleno = 1324 (0x52c), region = 72  ;;  %p468_p3 = scmp.lt.s32.totalorder (!%p417_p2), %s1016_s15, 31 }
   0xb   : > { %s1389_s15 = smov (!%p468_p3, %s1016_s15), 31  ;;  %vm515_vm0 = vcmask 130048   ;;  %v504_v7 = vld [vmem:[%s1375_s2 + $0x8] sm:$0x3]  ;;  %v1087_v9 = vmov 0   ;;  %v503_v11 = vld [vmem:[%s1375_s2] sm:$0xff] }
   0xc   : > { %s1172_s16 = sshll.u32 %s1389_s15, 3  ;;  %1064 = vset.pattern.permute.xlu0 %v1087_v9  ;;  %1065 = vset.pattern.permute.xlu1 %v1087_v9  ;;  %v700_v14 = vld [vmem:[%s1383_s10] sm:$0xff]  ;;  %v502_v21 = vld [vmem:[%s1374_s1 + $0x8] sm:$0x3]  ;;  %vm606_vm1 = vcmask 1041408   ;;  %vm602_vm2 = vcmask 80896  }
   0xd   : > { %s1178_s19 = scalar_lea.vmem %s1373_s0, %s1172_s16  ;;  %512 = vperm.xlu0 %1064, %v504_v7   ;;  %1066 = vset.pattern.permute.xlu2 %v1087_v9  ;;  %v501_v20 = vld [vmem:[%s1374_s1] sm:$0xff]  ;;  %vm642_vm3 = vcmask 1044480   ;;  %vm638_vm4 = vcmask 39936   ;;  %v701_v40 = vld [vmem:[%s1383_s10 + $0x8] sm:$0x3]  ;;  %vm673_vm5 = vcmask 64512   ;;  %s1282_s15 = scalar_lea.vmem %s1387_s14, %s1172_s16 }
   0xe   : > { %v500_v0 = vld [vmem:[%s1178_s19 + $0x78] sm:$0xff]  ;;  %v499_v1 = vld [vmem:[%s1178_s19 + $0x70] sm:$0xff]  ;;  %v498_v2 = vld [vmem:[%s1178_s19 + $0x68] sm:$0xff]  ;;  %s1327_s20 = scalar_lea.vmem %s1386_s13, %s1172_s16  ;;  %vm904_vm6 = vcmask 31744  }
   0xf   : > { %1022 = vmatpush.xpose.msk.msra.mxu0 %vm515_vm0, %v500_v0  ;;  %v497_v3 = vld [vmem:[%s1178_s19 + $0x60] sm:$0xff]  ;;  %v496_v4 = vld [vmem:[%s1178_s19 + $0x58] sm:$0xff]  ;;  %v495_v5 = vld [vmem:[%s1178_s19 + $0x50] sm:$0xff] }
  0x10   : > { %v494_v6 = vld [vmem:[%s1178_s19 + $0x48] sm:$0xff]  ;;  %v493_v8 = vld [vmem:[%s1178_s19 + $0x40] sm:$0xff]  ;;  %v492_v10 = vld [vmem:[%s1178_s19 + $0x38] sm:$0xff] }
  0x11   : > { %v491_v12 = vld [vmem:[%s1178_s19 + $0x30] sm:$0xff]  ;;  %v490_v13 = vld [vmem:[%s1178_s19 + $0x28] sm:$0xff]  ;;  %v489_v15 = vld [vmem:[%s1178_s19 + $0x20] sm:$0xff] }
  0x12   : > { %v488_v16 = vld [vmem:[%s1178_s19 + $0x18] sm:$0xff]  ;;  %v487_v17 = vld [vmem:[%s1178_s19 + $0x10] sm:$0xff]  ;;  %v486_v18 = vld [vmem:[%s1178_s19 + $0x8] sm:$0xff] }
  0x13   : > { %1023 = vmatpush.xpose.msk.msra.mxu0 %vm515_vm0, %v499_v1  ;;  %v485_v19 = vld [vmem:[%s1178_s19] sm:$0xff]  ;;  %v749_v41 = vld [vmem:[%s1385_s12 + $0x8] sm:$0xff] }
  0x14   : > { %v596_v22 = vld [vmem:[%s1377_s4] sm:$0x1f]  ;;  %v699_v51 = vld [vmem:[%s1382_s9 + $0x8] sm:$0x3] }
  0x15   : > { %507 = vperm.xlu0 %1064, %v503_v11   ;;  %599 = vperm.xlu1 %1065, %v596_v22   ;;  %v632_v23 = vld [vmem:[%s1379_s6] sm:$0xff]  ;;  %v747_v61 = vld [vmem:[%s1384_s11 + $0x8] sm:$0xff] }
  0x16   : > { %v748_v24 = vld [vmem:[%s1385_s12] sm:$0xff] }
  0x17   : > { %1024 = vmatpush.xpose.msk.msra.mxu0 %vm515_vm0, %v498_v2  ;;  %v595_v32 = vld [vmem:[%s1376_s3] sm:$0x1f] }
  0x18   : > { %v631_v37 = vld [vmem:[%s1378_s5] sm:$0xff] }
  0x19   : > { %v667_v39 = vld [vmem:[%s1381_s8] sm:$0x1f] }
  0x1a   : > { %670 = vperm.xlu2 %1066, %v667_v39   ;;  %v666_v45 = vld [vmem:[%s1380_s7] sm:$0x1f] }
  0x1b   : > { %1025 = vmatpush.xpose.msk.msra.mxu0 %vm515_vm0, %v497_v3  ;;  %v698_v49 = vld [vmem:[%s1382_s9] sm:$0xff] }
  0x1c   : > { %v746_v59 = vld [vmem:[%s1384_s11] sm:$0xff] }
  0x1d   : > { %704 = vperm.xlu0 %1064, %v700_v14   ;;  %635 = vperm.xlu1 %1065, %v632_v23  }
  0x1f   : > { %1026 = vmatpush.xpose.msk.msra.mxu0 %vm515_vm0, %v496_v4 }
  0x22   : > { %709 = vperm.xlu2 %1066, %v701_v40  }
  0x23   : > { %1027 = vmatpush.xpose.msk.msra.mxu0 %vm515_vm0, %v495_v5 }
  0x25   : > { %752 = vperm.xlu1 %1065, %v748_v24  }
  0x27   : > { %1028 = vmatpush.xpose.msk.msra.mxu0 %vm515_vm0, %v494_v6 }
  0x2a   : > { %757 = vperm.xlu2 %1066, %v749_v41  }
  0x2b   : > { %1029 = vmatpush.xpose.msk.msra.mxu0 %vm515_vm0, %v493_v8 }
  0x2f   : > { %1030 = vmatpush.xpose.msk.msra.mxu0 %vm515_vm0, %v492_v10 }
  0x33   : > { %1031 = vmatpush.xpose.msk.msra.mxu0 %vm515_vm0, %v491_v12 }
  0x37   : > { %1032 = vmatpush.xpose.msk.msra.mxu0 %vm515_vm0, %v490_v13 }
  0x3b   : > { %1033 = vmatpush.xpose.msk.msra.mxu0 %vm515_vm0, %v489_v15 }
  0x3f   : > { %1034 = vmatpush.xpose.msk.msra.mxu0 %vm515_vm0, %v488_v16 }
  0x43   : > { %1035 = vmatpush.xpose.msk.msra.mxu0 %vm515_vm0, %v487_v17 }
  0x47   : > { %1036 = vmatpush.xpose.msk.msra.mxu0 %vm515_vm0, %v486_v18 }
  0x4b   : > { %1037 = vmatpush.xpose.msk.msra.mxu0 %vm515_vm0, %v485_v19 }
  0x4e   : > { %1038 = vmatmul.msk.f32.vlgmr.msra.gmra.mxu0 %vm515_vm0, %v501_v20 }
  0x56   : > { %1039 = vmatmul.msk.f32.gmra.mxu0 %vm515_vm0, %v502_v21 }
  0x74   : > { %v671_v46 = vpop.permute.xlu2 %670 }
  0x7c   : > { %v710_v54 = vpop.permute.xlu2 %709 }
  0x7f   : > { %v513_v25 = vpop.permute.xlu0 %512 }
  0x84   : > { %v758_v1 = vpop.permute.xlu2 %757 }
  0x87   : > { %v508_v27 = vpop.permute.xlu0 %507  ;;  %v600_v34 = vpop.permute.xlu1 %599 }
  0x8f   : > { %v636_v42 = vpop.permute.xlu1 %635  ;;  %v705_v53 = vpop.permute.xlu0 %704 }
  0x97   : > { %v753_v62 = vpop.permute.xlu1 %752 }
  0xcb   : > { %v587_v26 = vpop.f32.mrf.mxu0 }
  0xcc   : > { %v588_v29 = vadd.f32 %v587_v26, %v508_v27 }
  0xd3   : > { %v590_v28 = vpop.f32.mrf.mxu0 }
  0xd4   : > { %v591_v30 = vadd.f32 %v590_v28, %v513_v25 }
  0xd6   : > { %1067 = vtanh.f32 %v591_v30 }
  0xd7   : > { %1069 = vtanh.f32 %v588_v29 }
  0xdc   : > { %v1068_v31 = vpop.eup %1067 }
  0xdd   : > { %1040 = vmatpush.msk.msra.mxu1 %vm606_vm1, %v1068_v31  ;;  %v1070_v33 = vpop.eup %1069 }
  0xdf   : > { %625 = vmatpush.msra.mxu1 %v1070_v33 }
  0xe0   : > { %1041 = vmatmul.msk.f32.vlgmr.msra.gmra.mxu1 %vm602_vm2, %v595_v32 }
 0x15d   : > { %v627_v35 = vpop.f32.mrf.mxu1 }
 0x15e   : > { %v628_v36 = vadd.f32 %v627_v35, %v600_v34 }
 0x160   : > { %1071 = vtanh.f32 %v628_v36 }
 0x166   : > { %v1072_v38 = vpop.eup %1071 }
 0x167   : > { %1042 = vmatpush.msk.msra.mxu2 %vm642_vm3, %v1072_v38 }
 0x168   : > { %1043 = vmatmul.msk.f32.vlgmr.msra.gmra.mxu2 %vm638_vm4, %v631_v37 }
 0x1eb   : > { %v663_v43 = vpop.f32.mrf.mxu2 }
 0x1ec   : > { %v664_v44 = vadd.f32 %v663_v43, %v636_v42 }
 0x1ee   : > { %692 = vmatpush.msra.mxu3 %v664_v44 }
 0x1ef   : > { %1044 = vmatmul.msk.f32.vlgmr.msra.gmra.mxu3 %vm673_vm5, %v666_v45 }
 0x272   : > { %v694_v47 = vpop.f32.mrf.mxu3 }
 0x273   : > { %v695_v48 = vadd.f32 %v694_v47, %v671_v46 }
 0x275   : > { %1073 = vtanh.f32 %v695_v48 }
 0x27b   : > { %v1074_v50 = vpop.eup %1073 }
 0x27c   : > { %1045 = vmatpush.msk.msrb.mxu2 %vm642_vm3, %v1074_v50 }
 0x27d   : > { %1046 = vmatmul.msk.f32.vlgmr.msrb.gmra.mxu2 %vm638_vm4, %v698_v49 }
 0x285   : > { %1047 = vmatmul.msk.f32.gmra.mxu2 %vm638_vm4, %v699_v51 }
 0x300   : > { %v738_v52 = vpop.f32.mrf.mxu2 }
 0x301   : > { %v739_v56 = vadd.f32 %v738_v52, %v705_v53 }
 0x308   : > { %v741_v55 = vpop.f32.mrf.mxu2 }
 0x309   : > { %v742_v57 = vadd.f32 %v741_v55, %v710_v54 }
 0x30b   : > { %1075 = vtanh.f32 %v742_v57 }
 0x30c   : > { %1077 = vtanh.f32 %v739_v56 }
 0x311   : > { %v1076_v58 = vpop.eup %1075 }
 0x312   : > { %1048 = vmatpush.msk.msrb.mxu3 %vm606_vm1, %v1076_v58  ;;  %v1078_v60 = vpop.eup %1077 }
 0x314   : > { %784 = vmatpush.msrb.mxu3 %v1078_v60 }
 0x315   : > { %1049 = vmatmul.msk.f32.vlgmr.msrb.gmra.mxu3 %vm602_vm2, %v746_v59 }
 0x31d   : > { %1050 = vmatmul.msk.f32.gmra.mxu3 %vm602_vm2, %v747_v61 }
 0x398   : > { %v786_v63 = vpop.f32.mrf.mxu3 }
 0x399   : > { %v787_v0 = vadd.f32 %v786_v63, %v753_v62 }
 0x39b   : > { %792 = vxpose.xlu0.b32.start [1/3] (short) %v787_v0, 128 }
 0x3a0   : > { %v789_v2 = vpop.f32.mrf.mxu3 }
 0x3a1   : > { %v790_v3 = vadd.f32 %v789_v2, %v758_v1 }
 0x3a3   : > { %793 = vxpose.xlu0.b32.cont [2/3] (short) %v790_v3, 128 }
 0x3ab   : > { %794 = vxpose.xlu0.b32.end [3/3] (short) %v664_v44, 128 }
 0x43f   : > { %v808_v4 = vpop.trf.xlu0 }
 0x440   : > { %824 = vst.msk [vmem:[%s1282_s15] sm:$0xff] %vm515_vm0, %v808_v4  ;;  %856 = vrot.lane.b32.xlu1 %v808_v4, %s1088_s17 }
 0x447   : > { %v809_v5 = vpop.trf.xlu0 }
 0x448   : > { %825 = vst.msk [vmem:[%s1282_s15 + $0x8] sm:$0xff] %vm515_vm0, %v809_v5  ;;  %858 = vrot.lane.b32.xlu2 %v809_v5, %s1088_s17 }
 0x44f   : > { %v810_v6 = vpop.trf.xlu0 }
 0x450   : > { %826 = vst.msk [vmem:[%s1282_s15 + $0x10] sm:$0xff] %vm515_vm0, %v810_v6  ;;  %860 = vrot.lane.b32.xlu1 %v810_v6, %s1088_s17 }
 0x457   : > { %v811_v7 = vpop.trf.xlu0 }
 0x458   : > { %827 = vst.msk [vmem:[%s1282_s15 + $0x18] sm:$0xff] %vm515_vm0, %v811_v7  ;;  %862 = vrot.lane.b32.xlu2 %v811_v7, %s1088_s17 }
 0x45f   : > { %v812_v8 = vpop.trf.xlu0 }
 0x460   : > { %828 = vst.msk [vmem:[%s1282_s15 + $0x20] sm:$0xff] %vm515_vm0, %v812_v8  ;;  %864 = vrot.lane.b32.xlu1 %v812_v8, %s1088_s17 }
 0x467   : > { %v813_v9 = vpop.trf.xlu0 }
 0x468   : > { %829 = vst.msk [vmem:[%s1282_s15 + $0x28] sm:$0xff] %vm515_vm0, %v813_v9  ;;  %866 = vrot.lane.b32.xlu2 %v813_v9, %s1088_s17 }
 0x46f   : > { %v814_v10 = vpop.trf.xlu0 }
 0x470   : > { %830 = vst.msk [vmem:[%s1282_s15 + $0x30] sm:$0xff] %vm515_vm0, %v814_v10  ;;  %868 = vrot.lane.b32.xlu1 %v814_v10, %s1088_s17 }
 0x477   : > { %v815_v11 = vpop.trf.xlu0 }
 0x478   : > { %831 = vst.msk [vmem:[%s1282_s15 + $0x38] sm:$0xff] %vm515_vm0, %v815_v11  ;;  %870 = vrot.lane.b32.xlu2 %v815_v11, %s1088_s17 }
 0x47f   : > { %v816_v12 = vpop.trf.xlu0 }
 0x480   : > { %832 = vst.msk [vmem:[%s1282_s15 + $0x40] sm:$0xff] %vm515_vm0, %v816_v12  ;;  %872 = vrot.lane.b32.xlu1 %v816_v12, %s1088_s17 }
 0x487   : > { %v817_v13 = vpop.trf.xlu0 }
 0x488   : > { %833 = vst.msk [vmem:[%s1282_s15 + $0x48] sm:$0xff] %vm515_vm0, %v817_v13  ;;  %874 = vrot.lane.b32.xlu2 %v817_v13, %s1088_s17 }
 0x48f   : > { %v818_v14 = vpop.trf.xlu0 }
 0x490   : > { %834 = vst.msk [vmem:[%s1282_s15 + $0x50] sm:$0xff] %vm515_vm0, %v818_v14  ;;  %876 = vrot.lane.b32.xlu1 %v818_v14, %s1088_s17 }
 0x497   : > { %v819_v15 = vpop.trf.xlu0 }
 0x498   : > { %835 = vst.msk [vmem:[%s1282_s15 + $0x58] sm:$0xff] %vm515_vm0, %v819_v15  ;;  %878 = vrot.lane.b32.xlu2 %v819_v15, %s1088_s17 }
 0x49f   : > { %v820_v16 = vpop.trf.xlu0 }
 0x4a0   : > { %836 = vst.msk [vmem:[%s1282_s15 + $0x60] sm:$0xff] %vm515_vm0, %v820_v16  ;;  %880 = vrot.lane.b32.xlu1 %v820_v16, %s1088_s17 }
 0x4a2   : > { %v859_v17 = vpop.permute.xlu2 %858 }
 0x4a3   : > { %906 = vst.msk [vmem:[%s1327_s20 + $0x8] sm:$0xff] %vm904_vm6, %v859_v17 }
 0x4a7   : > { %v821_v18 = vpop.trf.xlu0 }
 0x4a8   : > { %837 = vst.msk [vmem:[%s1282_s15 + $0x68] sm:$0xff] %vm515_vm0, %v821_v18  ;;  %882 = vrot.lane.b32.xlu2 %v821_v18, %s1088_s17 }
 0x4af   : > { %v822_v19 = vpop.trf.xlu0 }
 0x4b0   : > { %838 = vst.msk [vmem:[%s1282_s15 + $0x70] sm:$0xff] %vm515_vm0, %v822_v19  ;;  %884 = vrot.lane.b32.xlu0 %v822_v19, %s1088_s17 }
 0x4b2   : > { %v857_v20 = vpop.permute.xlu1 %856  ;;  %v863_v21 = vpop.permute.xlu2 %862 }
 0x4b3   : > { %905 = vst.msk [vmem:[%s1327_s20] sm:$0xff] %vm904_vm6, %v857_v20 }
 0x4b4   : > { %908 = vst.msk [vmem:[%s1327_s20 + $0x18] sm:$0xff] %vm904_vm6, %v863_v21 }
 0x4b7   : > { %v823_v22 = vpop.trf.xlu0 }
 0x4b8   : > { %839 = vst.msk [vmem:[%s1282_s15 + $0x78] sm:$0xff] %vm515_vm0, %v823_v22  ;;  %886 = vrot.lane.b32.xlu1 %v823_v22, %s1088_s17 }
 0x4c2   : > { %v861_v23 = vpop.permute.xlu1 %860  ;;  %v867_v24 = vpop.permute.xlu2 %866 }
 0x4c3   : > { %907 = vst.msk [vmem:[%s1327_s20 + $0x10] sm:$0xff] %vm904_vm6, %v861_v23 }
 0x4c4   : > { %910 = vst.msk [vmem:[%s1327_s20 + $0x28] sm:$0xff] %vm904_vm6, %v867_v24 }
 0x4d2   : > { %v865_v25 = vpop.permute.xlu1 %864  ;;  %v871_v26 = vpop.permute.xlu2 %870 }
 0x4d3   : > { %909 = vst.msk [vmem:[%s1327_s20 + $0x20] sm:$0xff] %vm904_vm6, %v865_v25 }
 0x4d4   : > { %912 = vst.msk [vmem:[%s1327_s20 + $0x38] sm:$0xff] %vm904_vm6, %v871_v26 }
 0x4e2   : > { %v869_v27 = vpop.permute.xlu1 %868  ;;  %v875_v28 = vpop.permute.xlu2 %874 }
 0x4e3   : > { %911 = vst.msk [vmem:[%s1327_s20 + $0x30] sm:$0xff] %vm904_vm6, %v869_v27 }
 0x4e4   : > { %914 = vst.msk [vmem:[%s1327_s20 + $0x48] sm:$0xff] %vm904_vm6, %v875_v28 }
 0x4f2   : > { %v873_v29 = vpop.permute.xlu1 %872  ;;  %v879_v30 = vpop.permute.xlu2 %878 }
 0x4f3   : > { %913 = vst.msk [vmem:[%s1327_s20 + $0x40] sm:$0xff] %vm904_vm6, %v873_v29 }
 0x4f4   : > { %916 = vst.msk [vmem:[%s1327_s20 + $0x58] sm:$0xff] %vm904_vm6, %v879_v30 }
 0x502   : > { %v877_v31 = vpop.permute.xlu1 %876  ;;  %v883_v32 = vpop.permute.xlu2 %882 }
 0x503   : > { %915 = vst.msk [vmem:[%s1327_s20 + $0x50] sm:$0xff] %vm904_vm6, %v877_v31 }
 0x504   : > { %918 = vst.msk [vmem:[%s1327_s20 + $0x68] sm:$0xff] %vm904_vm6, %v883_v32 }
 0x512   : > { %v881_v33 = vpop.permute.xlu1 %880 }
 0x513   : > { %917 = vst.msk [vmem:[%s1327_s20 + $0x60] sm:$0xff] %vm904_vm6, %v881_v33 }
 0x522   : > { %v885_v34 = vpop.permute.xlu0 %884 }
 0x523   : > { %919 = vst.msk [vmem:[%s1327_s20 + $0x70] sm:$0xff] %vm904_vm6, %v885_v34 }
 0x52a   : > { %v887_v35 = vpop.permute.xlu1 %886 }
 0x52b   : > { %920 = vst.msk [vmem:[%s1327_s20 + $0x78] sm:$0xff] %vm904_vm6, %v887_v35 }
 0x52c PF: > { %s25_s29 = sadd.s32 1, %s1085_s29  }
 0x52d   : > { %p22_p4 = scmp.ge.s32.totalorder %s25_s29, 4  }
 0x52f   :  { %24 = sbr.rel (!%p22_p4) target bundleno = 1 (0x1), region = 114 }

</bundles_post_ra>
